<compile_context>
chip_gen: v7x
topology: tpu7x:2x2x1
jax: 0.10.0
libtpu: 0.0.40
codegen_flags: <defaults>
</compile_context>

<pallas_src>
import math

import jax
import jax.numpy as jnp
from jax import lax
from jax.experimental import pallas as pl
from jax.experimental.pallas import tpu as pltpu


def rec_nn_kernel(x_ref, h0_ref, w_ih_t_ref, w_hh_ref, b_ref,
                  w_hy_t_ref, b_hy_ref, out_ref, xproj_ref, h_ref):
    """One (batch_block, T_chunk) grid step.

    x_ref:      (Tc, Bb, Ip)  time-major input chunk (compute_dtype)
    h0_ref:     (Bb, Hp)      initial hidden state (f32)
    w_ih_t_ref: (Ip, Hp)      w_ih.T (compute_dtype)
    w_hh_ref:   (Hp, Hp)      used as h @ w_hh (no transpose, as in the PyTorch code), f32
    b_ref:      (1, Hp)       b_ih + b_hh pre-summed (f32)
    w_hy_t_ref: (Hp, Op)      w_hy.T (compute_dtype)
    b_hy_ref:   (1, Op)       f32
    out_ref:    (Bb, Op)      f32, written on the last T chunk only
    xproj_ref:  (Tc, Bb, Hp)  VMEM scratch (per-chunk input projection), f32
    h_ref:      (Bb, Hp)      VMEM scratch carrying h across T chunks, f32
    """
    ti = pl.program_id(1)
    Tc, Bb, Ip = x_ref.shape
    Hp = w_hh_ref.shape[0]

    # (Re-)initialise the hidden state at the first chunk of this batch block.
    @pl.when(ti == 0)
    def _():
        h_ref[...] = h0_ref[...].astype(jnp.float32)

    # Hoisted input projection for the whole chunk: one MXU matmul + one bias add,
    # off the serial critical path.  Lands in VMEM scratch, read per step below.
    x_flat = x_ref[...].reshape(Tc * Bb, Ip)
    xproj = jnp.dot(x_flat, w_ih_t_ref[...],
                    preferred_element_type=jnp.float32) + b_ref[...]
    xproj_ref[...] = xproj.reshape(Tc, Bb, Hp)

    # Serially-dependent recurrence.  w_hh is read once so the RHS is identical across
    # iterations (Mosaic can keep it staged in the MXU); everything stays f32.
    w_hh = w_hh_ref[...]

    def step(t, h):
        pre = xproj_ref[t] + jnp.dot(h, w_hh, preferred_element_type=jnp.float32)
        return jnp.tanh(pre)

    h = lax.fori_loop(0, Tc, step, h_ref[...], unroll=min(Tc, 8))
    h_ref[...] = h

    # Output head + activation ('tanh') — only on the final chunk.
    @pl.when(ti == pl.num_programs(1) - 1)
    def _():
        logits = jnp.dot(h.astype(w_hy_t_ref.dtype), w_hy_t_ref[...],
                         preferred_element_type=jnp.float32) + b_hy_ref[...]
        out_ref[...] = jnp.tanh(logits).astype(out_ref.dtype)


def _round_up(n, m):
    return ((n + m - 1) // m) * m


def _chunk_len(T, target=32):
    """Largest divisor of T that is <= target (time steps cannot be zero-padded:
    a padded step would apply tanh(bias + h @ w_hh) and corrupt the state)."""
    c = min(T, target)
    while T % c:
        c -= 1
    return c


def rec_nn_forward(x_bti, h0, params, compute_dtype=jnp.float32,
                   t_chunk_target=32, batch_block=None):
    """x_bti: (B, T, I) as in the PyTorch module; returns (B, O).

    compute_dtype feeds the throughput-bound projection / head matmuls (bf16
    recommended on v6e/v7x at production sizes); the recurrence stays f32.
    """
    B, T, I = x_bti.shape
    H = params["w_hh"].shape[0]
    O = params["w_hy"].shape[0]

    csize = jnp.dtype(compute_dtype).itemsize
    b_align = 8 * (4 // csize)       # 8 rows for f32, 16 for bf16 (dense packed tiles)
    Bp = _round_up(B, b_align)
    Ip = _round_up(I, 128)
    Hp = _round_up(H, 128)
    Op = _round_up(O, 128)

    if batch_block is None:
        # Split the batch across two TensorCores (v7x) when there is enough of it.
        if Bp >= 2 * b_align and (Bp // b_align) % 2 == 0:
            batch_block = Bp // 2
        else:
            batch_block = Bp
    Bb = batch_block
    Tc = _chunk_len(T, t_chunk_target)
    grid = (Bp // Bb, T // Tc)

    # TODO(synk): at production sizes stream x batch-major straight from HBM via the
    # BlockSpec index_map instead of transposing/padding it here (extra HBM pass).
    x_tbi = jnp.transpose(x_bti, (1, 0, 2))
    x_p = jnp.pad(x_tbi, ((0, 0), (0, Bp - B), (0, Ip - I))).astype(compute_dtype)
    h0_p = jnp.pad(h0, ((0, Bp - B), (0, Hp - H))).astype(jnp.float32)

    w_ih_t = jnp.pad(params["w_ih"].T, ((0, Ip - I), (0, Hp - H))).astype(compute_dtype)
    # Recurrence weight stays f32 (latency-bound path; avoids compounding bf16 rounding).
    w_hh = jnp.pad(params["w_hh"], ((0, Hp - H), (0, Hp - H))).astype(jnp.float32)
    w_hy_t = jnp.pad(params["w_hy"].T, ((0, Hp - H), (0, Op - O))).astype(compute_dtype)

    # Pre-summed step bias (one add per step removed from the serial chain).
    b = jnp.pad((params["b_ih"] + params["b_hh"]).reshape(1, H),
                ((0, 0), (0, Hp - H))).astype(jnp.float32)
    b_hy = jnp.pad(params["b_hy"].reshape(1, O),
                   ((0, 0), (0, Op - O))).astype(jnp.float32)

    # Right-size the VMEM budget from the actual footprint (double-buffered blocks +
    # resident scratch), capped v7x-safe.
    vmem_bytes = 2 * (Tc * Bb * Ip * csize      # x chunk
                      + Bb * Hp * 4             # h0 block
                      + Ip * Hp * csize         # w_ih^T
                      + Hp * Hp * 4             # w_hh
                      + Hp * 4 + Op * 4         # biases
                      + Hp * Op * csize         # w_hy^T
                      + Bb * Op * 4)            # out block
    vmem_bytes += Tc * Bb * Hp * 4 + Bb * Hp * 4  # xproj + h scratch
    vmem_limit = min(max(int(vmem_bytes * 1.5) + (1 << 20), 8 << 20), 48 << 20)

    grid_spec = pltpu.PrefetchScalarGridSpec(
        num_scalar_prefetch=0,
        grid=grid,
        in_specs=[
            pl.BlockSpec((Tc, Bb, Ip), lambda bi, ti: (ti, bi, 0)),   # x (time-major)
            pl.BlockSpec((Bb, Hp), lambda bi, ti: (bi, 0)),           # h0
            pl.BlockSpec((Ip, Hp), lambda bi, ti: (0, 0)),            # w_ih^T (resident)
            pl.BlockSpec((Hp, Hp), lambda bi, ti: (0, 0)),            # w_hh   (resident)
            pl.BlockSpec((1, Hp), lambda bi, ti: (0, 0)),             # b_ih + b_hh
            pl.BlockSpec((Hp, Op), lambda bi, ti: (0, 0)),            # w_hy^T (resident)
            pl.BlockSpec((1, Op), lambda bi, ti: (0, 0)),             # b_hy
        ],
        out_specs=pl.BlockSpec((Bb, Op), lambda bi, ti: (bi, 0)),
        scratch_shapes=[
            pltpu.VMEM((Tc, Bb, Hp), jnp.float32),   # per-chunk input projection
            pltpu.VMEM((Bb, Hp), jnp.float32),       # hidden state across chunks
        ],
    )

    out_p = pl.pallas_call(
        rec_nn_kernel,
        out_shape=jax.ShapeDtypeStruct((Bp, Op), jnp.float32),
        grid_spec=grid_spec,
        compiler_params=pltpu.CompilerParams(
            dimension_semantics=("parallel", "arbitrary"),
            vmem_limit_bytes=vmem_limit,
        ),
    )(x_p, h0_p, w_ih_t, w_hh, b, w_hy_t, b_hy)

    return out_p[:B, :O]


def _xavier_uniform(key, shape):
    fan_out, fan_in = shape
    bound = math.sqrt(6.0 / (fan_in + fan_out))
    return jax.random.uniform(key, shape, jnp.float32, -bound, bound)


def init_params(key, input_size, hidden_size, output_size):
    ks = jax.random.split(key, 6)
    return {
        "w_ih": _xavier_uniform(ks[0], (hidden_size, input_size)),
        "w_hh": _xavier_uniform(ks[1], (hidden_size, hidden_size)),
        "b_ih": jax.random.normal(ks[2], (hidden_size,), jnp.float32),
        "b_hh": jax.random.normal(ks[3], (hidden_size,), jnp.float32),
        "w_hy": _xavier_uniform(ks[4], (output_size, hidden_size)),
        "b_hy": jax.random.normal(ks[5], (output_size,), jnp.float32),
    }


def rec_nn_reference(x_bti, h0, params):
    """Pure-JAX mirror of the PyTorch forward, for verification."""
    h = h0
    T = x_bti.shape[1]
    for t in range(T):
        xt = x_bti[:, t, :]
        pre = (xt @ params["w_ih"].T + h @ params["w_hh"]
               + params["b_hh"] + params["b_ih"])
        h = jnp.tanh(pre)
    out = h @ params["w_hy"].T + params["b_hy"]
    return jnp.tanh(out)


if __name__ == "__main__":
    B, T, I, H, O = 2, 8, 16, 32, 8

    key = jax.random.PRNGKey(0)
    kx, kh, kp = jax.random.split(key, 3)
    x = jax.random.normal(kx, (B, T, I), jnp.float32)     # (batch, seq, input)
    h0 = jax.random.normal(kh, (B, H), jnp.float32)       # initial hidden state
    params = init_params(kp, I, H, O)

    ref = rec_nn_reference(x, h0, params)

    # f32 everywhere (default): tight tolerance.
    out = jax.block_until_ready(rec_nn_forward(x, h0, params))
    assert out.shape == (B, O)
    assert jnp.allclose(out, ref, atol=1e-5, rtol=1e-5)

    # bf16 projection / head (recommended on v6e/v7x); recurrence stays f32.
    out_bf16 = jax.block_until_ready(
        rec_nn_forward(x, h0, params, compute_dtype=jnp.bfloat16))
    assert out_bf16.shape == (B, O)
    assert jnp.allclose(out_bf16, ref, atol=3e-2, rtol=0)

    print("KERNEL_OK")
</pallas_src>

<mosaic_0001>
module attributes {stable_mosaic.version = 11 : i64} {
  func.func @rec_nn_kernel(%arg0: i32, %arg1: i32, %arg2: memref<8x8x128xf32, #tpu.memory_space<vmem>>, %arg3: memref<8x128xf32, #tpu.memory_space<vmem>>, %arg4: memref<128x128xf32, #tpu.memory_space<vmem>>, %arg5: memref<128x128xf32, #tpu.memory_space<vmem>>, %arg6: memref<1x128xf32, #tpu.memory_space<vmem>>, %arg7: memref<128x128xf32, #tpu.memory_space<vmem>>, %arg8: memref<1x128xf32, #tpu.memory_space<vmem>>, %arg9: memref<8x128xf32, #tpu.memory_space<vmem>>, %arg10: memref<8x8x128xf32, #tpu.memory_space<vmem>>, %arg11: memref<8x128xf32, #tpu.memory_space<vmem>>) attributes {dimension_semantics = [#tpu.dimension_semantics<parallel>, #tpu.dimension_semantics<arbitrary>], iteration_bounds = array<i64: 1, 1>, scalar_prefetch = 0 : i64, scratch_operands = 2 : i64, tpu.core_type = #tpu.core_type<tc>, window_params = [{transform_indices = @transform_0, window_bounds = array<i64: 8, 8, 128>}, {transform_indices = @transform_1, window_bounds = array<i64: 8, 128>}, {pipeline_mode = #tpu.pipeline_mode<synchronous>, transform_indices = @transform_2, window_bounds = array<i64: 128, 128>}, {pipeline_mode = #tpu.pipeline_mode<synchronous>, transform_indices = @transform_3, window_bounds = array<i64: 128, 128>}, {pipeline_mode = #tpu.pipeline_mode<synchronous>, transform_indices = @transform_4, window_bounds = array<i64: 1, 128>}, {pipeline_mode = #tpu.pipeline_mode<synchronous>, transform_indices = @transform_5, window_bounds = array<i64: 128, 128>}, {pipeline_mode = #tpu.pipeline_mode<synchronous>, transform_indices = @transform_6, window_bounds = array<i64: 1, 128>}, {transform_indices = @transform_7, window_bounds = array<i64: 8, 128>}]} {
    %c0_i32 = arith.constant 0 : i32
    %0 = arith.cmpi eq, %arg1, %c0_i32 : i32
    %1 = arith.extui %0 : i1 to i32
    %c0_i32_0 = arith.constant 0 : i32
    %2 = arith.cmpi ne, %1, %c0_i32_0 : i32
    scf.if %2 {
      %c0_43 = arith.constant 0 : index
      %c0_44 = arith.constant 0 : index
      %66 = vector.load %arg3[%c0_43, %c0_44] : memref<8x128xf32, #tpu.memory_space<vmem>>, vector<8x128xf32>
      %c0_45 = arith.constant 0 : index
      %c0_46 = arith.constant 0 : index
      %67 = vector.load %arg11[%c0_45, %c0_46] : memref<8x128xf32, #tpu.memory_space<vmem>>, vector<8x128xf32>
      tpu.vector_store %arg11[%c0_45, %c0_46], %66 {strides = array<i32>} : memref<8x128xf32, #tpu.memory_space<vmem>>, vector<8x128xf32>,
    } else {
    }
    %c0 = arith.constant 0 : index
    %c0_1 = arith.constant 0 : index
    %c0_2 = arith.constant 0 : index
    %3 = vector.load %arg2[%c0, %c0_1, %c0_2] : memref<8x8x128xf32, #tpu.memory_space<vmem>>, vector<8x8x128xf32>
    %4 = vector.shape_cast %3 : vector<8x8x128xf32> to vector<64x128xf32>
    %c0_3 = arith.constant 0 : index
    %c0_4 = arith.constant 0 : index
    %5 = vector.load %arg4[%c0_3, %c0_4] : memref<128x128xf32, #tpu.memory_space<vmem>>, vector<128x128xf32>
    %cst = arith.constant dense<0.000000e+00> : vector<64x128xf32>
    %6 = tpu.matmul %4, %5, %cst {dimension_numbers = #tpu.dot_dimension_numbers<[1], [0], [0], [1], [0, 0, 1, 1], [], []>} : vector<64x128xf32>, vector<128x128xf32>, vector<64x128xf32> -> vector<64x128xf32>
    %c0_5 = arith.constant 0 : index
    %c0_6 = arith.constant 0 : index
    %7 = vector.load %arg6[%c0_5, %c0_6] : memref<1x128xf32, #tpu.memory_space<vmem>>, vector<1x128xf32>
    %8 = vector.broadcast %7 : vector<1x128xf32> to vector<64x128xf32>
    %9 = arith.addf %6, %8 : vector<64x128xf32>
    %10 = vector.shape_cast %9 : vector<64x128xf32> to vector<8x8x128xf32>
    %c0_7 = arith.constant 0 : index
    %c0_8 = arith.constant 0 : index
    %c0_9 = arith.constant 0 : index
    %11 = vector.load %arg10[%c0_7, %c0_8, %c0_9] : memref<8x8x128xf32, #tpu.memory_space<vmem>>, vector<8x8x128xf32>
    tpu.vector_store %arg10[%c0_7, %c0_8, %c0_9], %10 {strides = array<i32>} : memref<8x8x128xf32, #tpu.memory_space<vmem>>, vector<8x8x128xf32>,
    %c0_10 = arith.constant 0 : index
    %c0_11 = arith.constant 0 : index
    %12 = vector.load %arg5[%c0_10, %c0_11] : memref<128x128xf32, #tpu.memory_space<vmem>>, vector<128x128xf32>
    %c0_12 = arith.constant 0 : index
    %c0_13 = arith.constant 0 : index
    %13 = vector.load %arg11[%c0_12, %c0_13] : memref<8x128xf32, #tpu.memory_space<vmem>>, vector<8x128xf32>
    %c0_i32_14 = arith.constant 0 : i32
    %14 = arith.index_cast %c0_i32_14 : i32 to index
    %c0_15 = arith.constant 0 : index
    %c0_16 = arith.constant 0 : index
    %15 = vector.load %arg10[%14, %c0_15, %c0_16] : memref<8x8x128xf32, #tpu.memory_space<vmem>>, vector<1x8x128xf32>
    %16 = vector.shape_cast %15 : vector<1x8x128xf32> to vector<8x128xf32>
    %cst_17 = arith.constant dense<0.000000e+00> : vector<8x128xf32>
    %17 = tpu.matmul %13, %12, %cst_17 {dimension_numbers = #tpu.dot_dimension_numbers<[1], [0], [0], [1], [0, 0, 1, 1], [], []>} : vector<8x128xf32>, vector<128x128xf32>, vector<8x128xf32> -> vector<8x128xf32>
    %18 = arith.addf %16, %17 : vector<8x128xf32>
    %19 = math.tanh %18 : vector<8x128xf32>
    %c1_i32 = arith.constant 1 : i32
    %20 = arith.index_cast %c1_i32 : i32 to index
    %c0_18 = arith.constant 0 : index
    %c0_19 = arith.constant 0 : index
    %21 = vector.load %arg10[%20, %c0_18, %c0_19] : memref<8x8x128xf32, #tpu.memory_space<vmem>>, vector<1x8x128xf32>
    %22 = vector.shape_cast %21 : vector<1x8x128xf32> to vector<8x128xf32>
    %cst_20 = arith.constant dense<0.000000e+00> : vector<8x128xf32>
    %23 = tpu.matmul %19, %12, %cst_20 {dimension_numbers = #tpu.dot_dimension_numbers<[1], [0], [0], [1], [0, 0, 1, 1], [], []>} : vector<8x128xf32>, vector<128x128xf32>, vector<8x128xf32> -> vector<8x128xf32>
    %24 = arith.addf %22, %23 : vector<8x128xf32>
    %25 = math.tanh %24 : vector<8x128xf32>
    %c2_i32 = arith.constant 2 : i32
    %26 = arith.index_cast %c2_i32 : i32 to index
    %c0_21 = arith.constant 0 : index
    %c0_22 = arith.constant 0 : index
    %27 = vector.load %arg10[%26, %c0_21, %c0_22] : memref<8x8x128xf32, #tpu.memory_space<vmem>>, vector<1x8x128xf32>
    %28 = vector.shape_cast %27 : vector<1x8x128xf32> to vector<8x128xf32>
    %cst_23 = arith.constant dense<0.000000e+00> : vector<8x128xf32>
    %29 = tpu.matmul %25, %12, %cst_23 {dimension_numbers = #tpu.dot_dimension_numbers<[1], [0], [0], [1], [0, 0, 1, 1], [], []>} : vector<8x128xf32>, vector<128x128xf32>, vector<8x128xf32> -> vector<8x128xf32>
    %30 = arith.addf %28, %29 : vector<8x128xf32>
    %31 = math.tanh %30 : vector<8x128xf32>
    %c3_i32 = arith.constant 3 : i32
    %32 = arith.index_cast %c3_i32 : i32 to index
    %c0_24 = arith.constant 0 : index
    %c0_25 = arith.constant 0 : index
    %33 = vector.load %arg10[%32, %c0_24, %c0_25] : memref<8x8x128xf32, #tpu.memory_space<vmem>>, vector<1x8x128xf32>
    %34 = vector.shape_cast %33 : vector<1x8x128xf32> to vector<8x128xf32>
    %cst_26 = arith.constant dense<0.000000e+00> : vector<8x128xf32>
    %35 = tpu.matmul %31, %12, %cst_26 {dimension_numbers = #tpu.dot_dimension_numbers<[1], [0], [0], [1], [0, 0, 1, 1], [], []>} : vector<8x128xf32>, vector<128x128xf32>, vector<8x128xf32> -> vector<8x128xf32>
    %36 = arith.addf %34, %35 : vector<8x128xf32>
    %37 = math.tanh %36 : vector<8x128xf32>
    %c4_i32 = arith.constant 4 : i32
    %38 = arith.index_cast %c4_i32 : i32 to index
    %c0_27 = arith.constant 0 : index
    %c0_28 = arith.constant 0 : index
    %39 = vector.load %arg10[%38, %c0_27, %c0_28] : memref<8x8x128xf32, #tpu.memory_space<vmem>>, vector<1x8x128xf32>
    %40 = vector.shape_cast %39 : vector<1x8x128xf32> to vector<8x128xf32>
    %cst_29 = arith.constant dense<0.000000e+00> : vector<8x128xf32>
    %41 = tpu.matmul %37, %12, %cst_29 {dimension_numbers = #tpu.dot_dimension_numbers<[1], [0], [0], [1], [0, 0, 1, 1], [], []>} : vector<8x128xf32>, vector<128x128xf32>, vector<8x128xf32> -> vector<8x128xf32>
    %42 = arith.addf %40, %41 : vector<8x128xf32>
    %43 = math.tanh %42 : vector<8x128xf32>
    %c5_i32 = arith.constant 5 : i32
    %44 = arith.index_cast %c5_i32 : i32 to index
    %c0_30 = arith.constant 0 : index
    %c0_31 = arith.constant 0 : index
    %45 = vector.load %arg10[%44, %c0_30, %c0_31] : memref<8x8x128xf32, #tpu.memory_space<vmem>>, vector<1x8x128xf32>
    %46 = vector.shape_cast %45 : vector<1x8x128xf32> to vector<8x128xf32>
    %cst_32 = arith.constant dense<0.000000e+00> : vector<8x128xf32>
    %47 = tpu.matmul %43, %12, %cst_32 {dimension_numbers = #tpu.dot_dimension_numbers<[1], [0], [0], [1], [0, 0, 1, 1], [], []>} : vector<8x128xf32>, vector<128x128xf32>, vector<8x128xf32> -> vector<8x128xf32>
    %48 = arith.addf %46, %47 : vector<8x128xf32>
    %49 = math.tanh %48 : vector<8x128xf32>
    %c6_i32 = arith.constant 6 : i32
    %50 = arith.index_cast %c6_i32 : i32 to index
    %c0_33 = arith.constant 0 : index
    %c0_34 = arith.constant 0 : index
    %51 = vector.load %arg10[%50, %c0_33, %c0_34] : memref<8x8x128xf32, #tpu.memory_space<vmem>>, vector<1x8x128xf32>
    %52 = vector.shape_cast %51 : vector<1x8x128xf32> to vector<8x128xf32>
    %cst_35 = arith.constant dense<0.000000e+00> : vector<8x128xf32>
    %53 = tpu.matmul %49, %12, %cst_35 {dimension_numbers = #tpu.dot_dimension_numbers<[1], [0], [0], [1], [0, 0, 1, 1], [], []>} : vector<8x128xf32>, vector<128x128xf32>, vector<8x128xf32> -> vector<8x128xf32>
    %54 = arith.addf %52, %53 : vector<8x128xf32>
    %55 = math.tanh %54 : vector<8x128xf32>
    %c7_i32 = arith.constant 7 : i32
    %56 = arith.index_cast %c7_i32 : i32 to index
    %c0_36 = arith.constant 0 : index
    %c0_37 = arith.constant 0 : index
    %57 = vector.load %arg10[%56, %c0_36, %c0_37] : memref<8x8x128xf32, #tpu.memory_space<vmem>>, vector<1x8x128xf32>
    %58 = vector.shape_cast %57 : vector<1x8x128xf32> to vector<8x128xf32>
    %cst_38 = arith.constant dense<0.000000e+00> : vector<8x128xf32>
    %59 = tpu.matmul %55, %12, %cst_38 {dimension_numbers = #tpu.dot_dimension_numbers<[1], [0], [0], [1], [0, 0, 1, 1], [], []>} : vector<8x128xf32>, vector<128x128xf32>, vector<8x128xf32> -> vector<8x128xf32>
    %60 = arith.addf %58, %59 : vector<8x128xf32>
    %61 = math.tanh %60 : vector<8x128xf32>
    %c8_i32 = arith.constant 8 : i32
    %c0_39 = arith.constant 0 : index
    %c0_40 = arith.constant 0 : index
    %62 = vector.load %arg11[%c0_39, %c0_40] : memref<8x128xf32, #tpu.memory_space<vmem>>, vector<8x128xf32>
    tpu.vector_store %arg11[%c0_39, %c0_40], %61 {strides = array<i32>} : memref<8x128xf32, #tpu.memory_space<vmem>>, vector<8x128xf32>,
    %c0_i32_41 = arith.constant 0 : i32
    %63 = arith.cmpi eq, %arg1, %c0_i32_41 : i32
    %64 = arith.extui %63 : i1 to i32
    %c0_i32_42 = arith.constant 0 : i32
    %65 = arith.cmpi ne, %64, %c0_i32_42 : i32
    scf.if %65 {
      %c0_43 = arith.constant 0 : index
      %c0_44 = arith.constant 0 : index
      %66 = vector.load %arg7[%c0_43, %c0_44] : memref<128x128xf32, #tpu.memory_space<vmem>>, vector<128x128xf32>
      %cst_45 = arith.constant dense<0.000000e+00> : vector<8x128xf32>
      %67 = tpu.matmul %61, %66, %cst_45 {dimension_numbers = #tpu.dot_dimension_numbers<[1], [0], [0], [1], [0, 0, 1, 1], [], []>} : vector<8x128xf32>, vector<128x128xf32>, vector<8x128xf32> -> vector<8x128xf32>
      %c0_46 = arith.constant 0 : index
      %c0_47 = arith.constant 0 : index
      %68 = vector.load %arg8[%c0_46, %c0_47] : memref<1x128xf32, #tpu.memory_space<vmem>>, vector<1x128xf32>
      %69 = vector.broadcast %68 : vector<1x128xf32> to vector<8x128xf32>
      %70 = arith.addf %67, %69 : vector<8x128xf32>
      %71 = math.tanh %70 : vector<8x128xf32>
      %c0_48 = arith.constant 0 : index
      %c0_49 = arith.constant 0 : index
      %72 = vector.load %arg9[%c0_48, %c0_49] : memref<8x128xf32, #tpu.memory_space<vmem>>, vector<8x128xf32>
      tpu.vector_store %arg9[%c0_48, %c0_49], %71 {strides = array<i32>} : memref<8x128xf32, #tpu.memory_space<vmem>>, vector<8x128xf32>,
    } else {
    }
    return
  }
  func.func @transform_0(%arg0: i32, %arg1: i32) -> (i32, i32, i32) {
    %c0_i32 = arith.constant 0 : i32
    %c0_i32_0 = arith.constant 0 : i32
    return %arg1, %arg0, %c0_i32 : i32, i32, i32
  }
  func.func @transform_1(%arg0: i32, %arg1: i32) -> (i32, i32) {
    %c0_i32 = arith.constant 0 : i32
    %c0_i32_0 = arith.constant 0 : i32
    return %arg0, %c0_i32 : i32, i32
  }
  func.func @transform_2(%arg0: i32, %arg1: i32) -> (i32, i32) {
    %c0_i32 = arith.constant 0 : i32
    %c0_i32_0 = arith.constant 0 : i32
    %c0_i32_1 = arith.constant 0 : i32
    return %c0_i32, %c0_i32_0 : i32, i32
  }
  func.func @transform_3(%arg0: i32, %arg1: i32) -> (i32, i32) {
    %c0_i32 = arith.constant 0 : i32
    %c0_i32_0 = arith.constant 0 : i32
    %c0_i32_1 = arith.constant 0 : i32
    return %c0_i32, %c0_i32_0 : i32, i32
  }
  func.func @transform_4(%arg0: i32, %arg1: i32) -> (i32, i32) {
    %c0_i32 = arith.constant 0 : i32
    %c0_i32_0 = arith.constant 0 : i32
    %c0_i32_1 = arith.constant 0 : i32
    return %c0_i32, %c0_i32_0 : i32, i32
  }
  func.func @transform_5(%arg0: i32, %arg1: i32) -> (i32, i32) {
    %c0_i32 = arith.constant 0 : i32
    %c0_i32_0 = arith.constant 0 : i32
    %c0_i32_1 = arith.constant 0 : i32
    return %c0_i32, %c0_i32_0 : i32, i32
  }
  func.func @transform_6(%arg0: i32, %arg1: i32) -> (i32, i32) {
    %c0_i32 = arith.constant 0 : i32
    %c0_i32_0 = arith.constant 0 : i32
    %c0_i32_1 = arith.constant 0 : i32
    return %c0_i32, %c0_i32_0 : i32, i32
  }
  func.func @transform_7(%arg0: i32, %arg1: i32) -> (i32, i32) {
    %c0_i32 = arith.constant 0 : i32
    %c0_i32_0 = arith.constant 0 : i32
    return %arg0, %c0_i32 : i32, i32
  }
}

</mosaic_0001>

<bundles_post_ra>
// kernel: tpu_custom_call.1
= control target key start
LH: loop header
LB: loop body
LE: loop exit
PB: predicated region body
PF: predicated region fallthrough
CT: control target
= control target key end

     0   :  { %12 = vsyncpa [#allocation5], 0  ;;  %s2255_s0 = inlined_call_operand.hbm [shape: f32[8,8,128], index: 0, kind: input, shape index: {}]   ;;  %s2256_s1 = inlined_call_operand.hbm [shape: f32[8,128], index: 1, kind: input, shape index: {}]   ;;  %s2257_s2 = inlined_call_operand.hbm [shape: f32[128,128], index: 2, kind: input, shape index: {}]   ;;  %s2258_s3 = inlined_call_operand.hbm [shape: f32[128,128], index: 3, kind: input, shape index: {}]   ;;  %s2259_s4 = inlined_call_operand.vmem [shape: f32[1,128], index: 4, kind: input, shape index: {}]   ;;  %s2260_s5 = inlined_call_operand.hbm [shape: f32[128,128], index: 5, kind: input, shape index: {}]   ;;  %s2261_s6 = inlined_call_operand.vmem [shape: f32[1,128], index: 6, kind: input, shape index: {}]   ;;  %s2262_s7 = inlined_call_operand.hbm [shape: f32[8,128], index: 7, kind: output, shape index: {}]  }
   0x1   :  { %13 = vsyncpa [#allocation8], 0 }
   0x2   :  { %14 = vsyncpa [#allocation11], 0 }
   0x3   :  { %15 = vsyncpa [#allocation6], 0  ;;  %s1922_s24 = smov [#allocation7]   ;;  %s1782_s28 = scalar_lea.hbm %s2256_s1, 128 }
   0x4   :  { %s34_s25 = sshll.u32 %s1922_s24, 4  ;;  %p1783_p0 = scmp.ne.s32.totalorder %s2256_s1, %s1782_s28  ;;  %s35_s25 = int_to_ptr.vmem [resolvable:$true] %s34_s25 }
   0x5   :  { %p1786_p1 = scmp.lt.u32.totalorder %s1782_s28, %s2256_s1 }
   0x7   :  { %p1788_p2 = pnand %p1786_p1, %p1783_p0 }
   0x9   :  { %1791 = shalt.err (!%p1788_p2)
}
   0xa   :  { %s1792_s10 = scalar_lea.vmem %s35_s25, 128  ;;  %p1797_p4 = scmp.lt.s32.totalorder %s35_s25, %s35_s25 }
   0xb   :  { %p1793_p3 = scmp.ne.s32.totalorder %s35_s25, %s1792_s10  ;;  %p1798_p5 = scmp.lt.s32.totalorder %s1792_s10, %s1792_s10 }
   0xd   :  { %p1799_p6 = por %p1798_p5, %p1797_p4 }
   0xf   :  { %p1800_p7 = pnand %p1799_p6, %p1793_p3 }
  0x11   :  { %1803 = shalt.err (!%p1800_p7)
}
  0x12   :  { %37 = dma.hbm_to_vmem [thread:$0]  %s2256_s1, 128, %s35_s25, [#allocation8]  }
  0x13   :  { %s1923_s13 = smov [#allocation10]   ;;  %s1924_s15 = smov [#allocation4]  }
  0x14   :  { %s55_s14 = sshll.u32 %s1923_s13, 4  ;;  %s21_s16 = sshll.u32 %s1924_s15, 4  ;;  %s56_s14 = int_to_ptr.vmem [resolvable:$true] %s55_s14  ;;  %s22_s16 = int_to_ptr.vmem [resolvable:$true] %s21_s16 }
  0x15   :  { %s1804_s19 = scalar_lea.hbm %s2258_s3, 2048 }
  0x16   :  { %p1805_p8 = scmp.ne.s32.totalorder %s2258_s3, %s1804_s19  ;;  %p1808_p9 = scmp.lt.u32.totalorder %s1804_s19, %s2258_s3 }
  0x18   :  { %p1810_p10 = pnand %p1808_p9, %p1805_p8 }
  0x1a   :  { %1813 = shalt.err (!%p1810_p10)
}
  0x1b   :  { %s1814_s1 = scalar_lea.vmem %s56_s14, 2048  ;;  %p1819_p12 = scmp.lt.s32.totalorder %s56_s14, %s56_s14 }
  0x1c   :  { %p1815_p11 = scmp.ne.s32.totalorder %s56_s14, %s1814_s1  ;;  %p1820_p13 = scmp.lt.s32.totalorder %s1814_s1, %s1814_s1 }
  0x1e   :  { %p1821_p0 = por %p1820_p13, %p1819_p12 }
  0x20   :  { %p1822_p1 = pnand %p1821_p0, %p1815_p11 }
  0x22   :  { %1825 = shalt.err (!%p1822_p1)
}
  0x23   :  { %s1925_s24 = smov 128   ;;  %s1926_s25 = smov 8  }
  0x24   :  { %61 = dma.hbm_to_vmem [thread:$0]  %s2258_s3, 2048, %s56_s14, [#allocation11], %s1925_s24, %s1925_s24, %s1926_s25  }
  0x25   :  { %s1826_s30 = scalar_lea.hbm %s2255_s0, 1024 }
  0x26   :  { %p1827_p2 = scmp.ne.s32.totalorder %s2255_s0, %s1826_s30  ;;  %p1830_p3 = scmp.lt.u32.totalorder %s1826_s30, %s2255_s0 }
  0x28   :  { %p1832_p4 = pnand %p1830_p3, %p1827_p2 }
  0x2a   :  { %1835 = shalt.err (!%p1832_p4)
}
  0x2b   :  { %s1836_s12 = scalar_lea.vmem %s22_s16, 1024  ;;  %p1841_p6 = scmp.lt.s32.totalorder %s22_s16, %s22_s16 }
  0x2c   :  { %p1837_p5 = scmp.ne.s32.totalorder %s22_s16, %s1836_s12  ;;  %p1842_p7 = scmp.lt.s32.totalorder %s1836_s12, %s1836_s12 }
  0x2e   :  { %p1843_p8 = por %p1842_p7, %p1841_p6 }
  0x30   :  { %p1844_p9 = pnand %p1843_p8, %p1837_p5 }
  0x32   :  { %1847 = shalt.err (!%p1844_p9)
}
  0x33   :  { %27 = dma.hbm_to_vmem [thread:$0]  %s2255_s0, 1024, %s22_s16, [#allocation5], %s1925_s24, %s1925_s24, %s1926_s25  }
  0x34   :  { %s1927_s14 = smov [#allocation9]   ;;  %s1928_s17 = smov [#allocation12]  }
  0x35   :  { %s43_s15 = sshll.u32 %s1927_s14, 4  ;;  %s69_s18 = sshll.u32 %s1928_s17, 4  ;;  %s44_s15 = int_to_ptr.vmem [resolvable:$true] %s43_s15  ;;  %s70_s18 = int_to_ptr.vmem [resolvable:$true] %s69_s18 }
  0x36   :  { %s1848_s21 = scalar_lea.hbm %s2257_s2, 2048 }
  0x37   :  { %p1849_p10 = scmp.ne.s32.totalorder %s2257_s2, %s1848_s21  ;;  %p1852_p11 = scmp.lt.u32.totalorder %s1848_s21, %s2257_s2 }
  0x39   :  { %p1854_p12 = pnand %p1852_p11, %p1849_p10 }
  0x3b   :  { %1857 = shalt.err (!%p1854_p12)
}
  0x3c   :  { %s1858_s0 = scalar_lea.vmem %s44_s15, 2048  ;;  %p1863_p0 = scmp.lt.s32.totalorder %s44_s15, %s44_s15 }
  0x3d   :  { %p1859_p13 = scmp.ne.s32.totalorder %s44_s15, %s1858_s0  ;;  %p1864_p1 = scmp.lt.s32.totalorder %s1858_s0, %s1858_s0 }
  0x3f   :  { %p1865_p2 = por %p1864_p1, %p1863_p0 }
  0x41   :  { %p1866_p3 = pnand %p1865_p2, %p1859_p13 }
  0x43   :  { %1869 = shalt.err (!%p1866_p3)
}
  0x44   :  { %49 = dma.hbm_to_vmem [thread:$0]  %s2257_s2, 2048, %s44_s15, [#allocation8], %s1925_s24, %s1925_s24, %s1926_s25  }
  0x45   :  { %s1870_s30 = scalar_lea.hbm %s2260_s5, 2048 }
  0x46   :  { %p1871_p4 = scmp.ne.s32.totalorder %s2260_s5, %s1870_s30  ;;  %p1874_p5 = scmp.lt.u32.totalorder %s1870_s30, %s2260_s5 }
  0x48   :  { %p1876_p6 = pnand %p1874_p5, %p1871_p4 }
  0x4a   :  { %1879 = shalt.err (!%p1876_p6)
}
  0x4b   :  { %s1880_s12 = scalar_lea.vmem %s70_s18, 2048  ;;  %p1885_p8 = scmp.lt.s32.totalorder %s70_s18, %s70_s18 }
  0x4c   :  { %p1881_p7 = scmp.ne.s32.totalorder %s70_s18, %s1880_s12  ;;  %p1886_p9 = scmp.lt.s32.totalorder %s1880_s12, %s1880_s12 }
  0x4e   :  { %p1887_p10 = por %p1886_p9, %p1885_p8 }
  0x50   :  { %p1888_p11 = pnand %p1887_p10, %p1881_p7 }
  0x52   :  { %1891 = shalt.err (!%p1888_p11)
}
  0x53   :  { %75 = dma.hbm_to_vmem [thread:$0]  %s2260_s5, 2048, %s70_s18, [#allocation11], %s1925_s24, %s1925_s24, %s1926_s25  }
  0x54   :  { %1914 = dma.done.wait [#allocation5], 1024  }
  0x55   :  { %1915 = vsyncadd [#allocation5], 4294966272 }
  0x56   :  { %1916 = dma.done.wait [#allocation8], 2176  }
  0x57   :  { %1917 = vsyncadd [#allocation8], 4294965120 }
  0x58   :  { %1918 = dma.done.wait [#allocation11], 4096  }
  0x59   :  { %1919 = vsyncadd [#allocation11], 4294963200  ;;  %v1929_v0 = vmov 0.0|0.0   ;;  %vm1930_vm0 = vmmov 0   ;;  %v1931_v1 = vmov 0.0   ;;  %v107_v2 = vld [vmem:[#allocation9] sm:$0xff] }
  0x5a   :  { %1537 = vmatprep.subr.bf16.mxu1 %v1929_v0  ;;  %1222 = vmatprep.mubr.msk.f32.mxu1 %vm1930_vm0, %v1931_v1  ;;  %v108_v3 = vld [vmem:[#allocation9 + $0x8] sm:$0xff]  ;;  %v243_v4 = vld [vmem:[#allocation10] sm:$0xff]  ;;  %v109_v7 = vld [vmem:[#allocation9 + $0x10] sm:$0xff]  ;;  %s1932_s13 = smov [#allocation13]  }
  0x5b   :  { %v1505_v5 = vpack.c.bf16 %v108_v3, %v107_v2  ;;  %v244_v6 = vld [vmem:[#allocation10 + $0x8] sm:$0xff]  ;;  %v110_v8 = vld [vmem:[#allocation9 + $0x18] sm:$0xff]  ;;  %v245_v11 = vld [vmem:[#allocation10 + $0x10] sm:$0xff]  ;;  %s956_s14 = sshll.u32 %s1932_s13, 4  ;;  %s957_s14 = int_to_ptr.vmem [resolvable:$true] %s956_s14 }
  0x5c   :  { %v2048_v9 = vpack.c.bf16 %v244_v6, %v243_v4  ;;  %v1509_v10 = vpack.c.bf16 %v110_v8, %v109_v7  ;;  %v246_v12 = vld [vmem:[#allocation10 + $0x18] sm:$0xff]  ;;  %v111_v13 = vld [vmem:[#allocation9 + $0x20] sm:$0xff]  ;;  %v112_v14 = vld [vmem:[#allocation9 + $0x28] sm:$0xff]  ;;  %s1892_s15 = scalar_lea.vmem %s957_s14, 128  ;;  %p1897_p13 = scmp.lt.s32.totalorder %s957_s14, %s957_s14 }
  0x5d   :  { %1506 = vmatprep.subr.bf16.mxu0 %v1505_v5  ;;  %v2051_v15 = vpack.c.bf16 %v246_v12, %v245_v11  ;;  %v1513_v16 = vpack.c.bf16 %v112_v14, %v111_v13  ;;  %v247_v17 = vld [vmem:[#allocation10 + $0x20] sm:$0xff]  ;;  %v248_v18 = vld [vmem:[#allocation10 + $0x28] sm:$0xff]  ;;  %v113_v19 = vld [vmem:[#allocation9 + $0x30] sm:$0xff]  ;;  %p1893_p12 = scmp.ne.s32.totalorder %s957_s14, %s1892_s15  ;;  %p1898_p0 = scmp.lt.s32.totalorder %s1892_s15, %s1892_s15 }
  0x5e   :  { %1508 = vmatpush3.bf16.msra.mxu0 %v1505_v5  ;;  %1539 = vmatpush3.bf16.msra.mxu1 %v2048_v9  ;;  %v114_v20 = vld [vmem:[#allocation9 + $0x38] sm:$0xff]  ;;  %v2055_v21 = vpack.c.bf16 %v248_v18, %v247_v17  ;;  %v249_v23 = vld [vmem:[#allocation10 + $0x30] sm:$0xff]  ;;  %v115_v25 = vld [vmem:[#allocation9 + $0x40] sm:$0xff] }
  0x5f   :  { %1510 = vmatprep.subr.bf16.mxu0 %v1509_v10  ;;  %1540 = vmatprep.subr.bf16.mxu1 %v1929_v0  ;;  %v1517_v22 = vpack.c.bf16 %v114_v20, %v113_v19  ;;  %v250_v24 = vld [vmem:[#allocation10 + $0x38] sm:$0xff]  ;;  %v116_v26 = vld [vmem:[#allocation9 + $0x48] sm:$0xff]  ;;  %v251_v30 = vld [vmem:[#allocation10 + $0x40] sm:$0xff]  ;;  %p1899_p1 = por %p1898_p0, %p1897_p13 }
  0x60   :  { %v99_v27 = vld [vmem:[#allocation4] sm:$0xff]  ;;  %v2059_v28 = vpack.c.bf16 %v250_v24, %v249_v23  ;;  %v1521_v29 = vpack.c.bf16 %v116_v26, %v115_v25  ;;  %v252_v31 = vld [vmem:[#allocation10 + $0x48] sm:$0xff]  ;;  %v117_v32 = vld [vmem:[#allocation9 + $0x50] sm:$0xff] }
  0x61   :  { %1178 = vmatprep.mubr.f32.mxu0 %v99_v27  ;;  %v118_v33 = vld [vmem:[#allocation9 + $0x58] sm:$0xff]  ;;  %v2063_v34 = vpack.c.bf16 %v252_v31, %v251_v30  ;;  %v253_v36 = vld [vmem:[#allocation10 + $0x50] sm:$0xff]  ;;  %v119_v38 = vld [vmem:[#allocation9 + $0x60] sm:$0xff]  ;;  %p1900_p2 = pnand %p1899_p1, %p1893_p12 }
  0x62   :  { %1512 = vmatpush3.bf16.msra.mxu0 %v1509_v10  ;;  %1542 = vmatpush3.bf16.msra.mxu1 %v2051_v15  ;;  %v1525_v35 = vpack.c.bf16 %v118_v33, %v117_v32  ;;  %v254_v37 = vld [vmem:[#allocation10 + $0x58] sm:$0xff]  ;;  %v120_v39 = vld [vmem:[#allocation9 + $0x68] sm:$0xff]  ;;  %v255_v42 = vld [vmem:[#allocation10 + $0x60] sm:$0xff] }
  0x63   :  { %1514 = vmatprep.subr.bf16.mxu0 %v1513_v16  ;;  %1543 = vmatprep.subr.bf16.mxu1 %v1929_v0  ;;  %v2067_v40 = vpack.c.bf16 %v254_v37, %v253_v36  ;;  %v1529_v41 = vpack.c.bf16 %v120_v39, %v119_v38  ;;  %v256_v43 = vld [vmem:[#allocation10 + $0x68] sm:$0xff]  ;;  %v121_v44 = vld [vmem:[#allocation9 + $0x70] sm:$0xff]  ;;  %v122_v45 = vld [vmem:[#allocation9 + $0x78] sm:$0xff] }
  0x64   :  { %v2071_v46 = vpack.c.bf16 %v256_v43, %v255_v42  ;;  %v1533_v47 = vpack.c.bf16 %v122_v45, %v121_v44  ;;  %v257_v48 = vld [vmem:[#allocation10 + $0x70] sm:$0xff]  ;;  %v258_v49 = vld [vmem:[#allocation10 + $0x78] sm:$0xff]  ;;  %v100_v51 = vld [vmem:[#allocation4 + $0x8] sm:$0xff] }
  0x65   :  { %v2075_v50 = vpack.c.bf16 %v258_v49, %v257_v48  ;;  %v97_v52 = vld [vmem:[#allocation7] sm:$0xff]  ;;  %v101_v53 = vld [vmem:[#allocation4 + $0x10] sm:$0xff]  ;;  %v102_v54 = vld [vmem:[#allocation4 + $0x18] sm:$0xff] }
  0x66   :  { %1516 = vmatpush3.bf16.msra.mxu0 %v1513_v16  ;;  %1545 = vmatpush3.bf16.msra.mxu1 %v2055_v21  ;;  %v103_v55 = vld [vmem:[#allocation4 + $0x20] sm:$0xff]  ;;  %v104_v56 = vld [vmem:[#allocation4 + $0x28] sm:$0xff]  ;;  %v105_v57 = vld [vmem:[#allocation4 + $0x30] sm:$0xff] }
  0x67   :  { %1518 = vmatprep.subr.bf16.mxu0 %v1517_v22  ;;  %1546 = vmatprep.subr.bf16.mxu1 %v1929_v0  ;;  %v106_v58 = vld [vmem:[#allocation4 + $0x38] sm:$0xff]  ;;  %v2120_v59 = vld [vmem:[%s2259_s4] ss:$0 sm:$0xff]  ;;  %v855_v36 = vld [vmem:[#allocation12] sm:$0xff] }
  0x68   :  { %v856_v37 = vld [vmem:[#allocation12 + $0x8] sm:$0xff]  ;;  %v857_v38 = vld [vmem:[#allocation12 + $0x10] sm:$0xff]  ;;  %v859_v42 = vld [vmem:[#allocation12 + $0x20] sm:$0xff] }
  0x69   :  { %v1730_v39 = vpack.c.bf16 %v856_v37, %v855_v36  ;;  %v860_v43 = vld [vmem:[#allocation12 + $0x28] sm:$0xff]  ;;  %v861_v45 = vld [vmem:[#allocation12 + $0x30] sm:$0xff] }
  0x6a   :  { %1520 = vmatpush3.bf16.msra.mxu0 %v1517_v22  ;;  %1548 = vmatpush3.bf16.msra.mxu1 %v2059_v28  ;;  %v1736_v44 = vpack.c.bf16 %v860_v43, %v859_v42  ;;  %v864_v48 = vld [vmem:[#allocation12 + $0x48] sm:$0xff] }
  0x6b   :  { %1522 = vmatprep.subr.bf16.mxu0 %v1521_v29  ;;  %1549 = vmatprep.subr.bf16.mxu1 %v1929_v0 }
  0x6e   :  { %1524 = vmatpush3.bf16.msra.mxu0 %v1521_v29  ;;  %1551 = vmatpush3.bf16.msra.mxu1 %v2063_v34 }
  0x6f   :  { %1526 = vmatprep.subr.bf16.mxu0 %v1525_v35  ;;  %1552 = vmatprep.subr.bf16.mxu1 %v1929_v0 }
  0x72   :  { %1528 = vmatpush3.bf16.msra.mxu0 %v1525_v35  ;;  %1554 = vmatpush3.bf16.msra.mxu1 %v2067_v40 }
  0x73   :  { %1530 = vmatprep.subr.bf16.mxu0 %v1529_v41  ;;  %1555 = vmatprep.subr.bf16.mxu1 %v1929_v0 }
  0x76   :  { %1532 = vmatpush3.bf16.msra.mxu0 %v1529_v41  ;;  %1557 = vmatpush3.bf16.msra.mxu1 %v2071_v46 }
  0x77   :  { %1534 = vmatprep.subr.bf16.mxu0 %v1533_v47  ;;  %1558 = vmatprep.subr.bf16.mxu1 %v1929_v0 }
  0x7a   :  { %1536 = vmatpush3.bf16.msra.mxu0 %v1533_v47  ;;  %1560 = vmatpush3.bf16.msra.mxu1 %v2075_v50 }
  0x7b   :  { %1561 = vmatprep.subr.bf16.mxu0 %v1929_v0  ;;  %1585 = vmatprep.subr.bf16.mxu1 %v1929_v0 }
  0x7d   :  { %1179 = vmatmul.mubr.f32.vlgmr.msra.gmra.mrb[0].mxu0 %v100_v51  ;;  %1223 = vmatmul.mubr.f32.vlgmr.msra.gmra.mrb[0].mxu1 %v97_v52 }
  0x7e   :  { %1563 = vmatpush3.bf16.msra.mxu0 %v2048_v9  ;;  %1587 = vmatpush3.bf16.msra.mxu1 %v2048_v9 }
  0x7f   :  { %1564 = vmatprep.subr.bf16.mxu0 %v1929_v0  ;;  %1588 = vmatprep.subr.bf16.mxu1 %v1929_v0 }
  0x80   :  { %1292 = vmatprep.mubr.msk.f32.mxu1 %vm1930_vm0, %v1931_v1  ;;  %1181 = vmatprep.mubr.f32.mxu0 %v101_v53 }
  0x81   :  { %1182 = vmatmul.mubr.f32.gmra.mrb[2].mxu0 %v102_v54 }
  0x82   :  { %1566 = vmatpush3.bf16.msra.mxu0 %v2051_v15  ;;  %1590 = vmatpush3.bf16.msra.mxu1 %v2051_v15 }
  0x83   :  { %1567 = vmatprep.subr.bf16.mxu0 %v1929_v0  ;;  %1591 = vmatprep.subr.bf16.mxu1 %v1929_v0 }
  0x84   :  { %1184 = vmatprep.mubr.f32.mxu0 %v103_v55  ;;  %v865_v55 = vld [vmem:[#allocation12 + $0x50] sm:$0xff] }
  0x85   :  { %1185 = vmatmul.mubr.f32.gmra.mrb[4].mxu0 %v104_v56  ;;  %v866_v56 = vld [vmem:[#allocation12 + $0x58] sm:$0xff] }
  0x86   :  { %1569 = vmatpush3.bf16.msra.mxu0 %v2055_v21  ;;  %1593 = vmatpush3.bf16.msra.mxu1 %v2055_v21 }
  0x87   :  { %1570 = vmatprep.subr.bf16.mxu0 %v1929_v0  ;;  %1594 = vmatprep.subr.bf16.mxu1 %v1929_v0 }
  0x88   :  { %1187 = vmatprep.mubr.f32.mxu0 %v105_v57  ;;  %v1745_v57 = vpack.c.bf16 %v866_v56, %v865_v55 }
  0x89   :  { %1188 = vmatmul.mubr.f32.gmra.mrb[6].mxu0 %v106_v58  ;;  %v867_v58 = vld [vmem:[#allocation12 + $0x60] sm:$0xff] }
  0x8a   :  { %1572 = vmatpush3.bf16.msra.mxu0 %v2059_v28  ;;  %1596 = vmatpush3.bf16.msra.mxu1 %v2059_v28 }
  0x8b   :  { %1573 = vmatprep.subr.bf16.mxu0 %v1929_v0  ;;  %1597 = vmatprep.subr.bf16.mxu1 %v1929_v0 }
  0x8c   :  { %1257 = vmatprep.mubr.msk.f32.mxu0 %vm1930_vm0, %v1931_v1 }
  0x8e   :  { %1575 = vmatpush3.bf16.msra.mxu0 %v2063_v34  ;;  %1599 = vmatpush3.bf16.msra.mxu1 %v2063_v34 }
  0x8f   :  { %1576 = vmatprep.subr.bf16.mxu0 %v1929_v0  ;;  %1600 = vmatprep.subr.bf16.mxu1 %v1929_v0 }
  0x92   :  { %1578 = vmatpush3.bf16.msra.mxu0 %v2067_v40  ;;  %1602 = vmatpush3.bf16.msra.mxu1 %v2067_v40 }
  0x93   :  { %1579 = vmatprep.subr.bf16.mxu0 %v1929_v0  ;;  %1603 = vmatprep.subr.bf16.mxu1 %v1929_v0 }
  0x96   :  { %1581 = vmatpush3.bf16.msra.mxu0 %v2071_v46  ;;  %1605 = vmatpush3.bf16.msra.mxu1 %v2071_v46 }
  0x97   :  { %1582 = vmatprep.subr.bf16.mxu0 %v1929_v0  ;;  %1606 = vmatprep.subr.bf16.mxu1 %v1929_v0 }
  0x9a   :  { %1584 = vmatpush3.bf16.msra.mxu0 %v2075_v50  ;;  %1608 = vmatpush3.bf16.msra.mxu1 %v2075_v50 }
  0x9b   :  { %1609 = vmatprep.subr.bf16.mxu0 %v1929_v0  ;;  %1633 = vmatprep.subr.bf16.mxu1 %v1929_v0 }
 0x150   :  { %v1180_v60 = vpop.f32.mrb[0].mxu0  ;;  %v327_v61 = vpop.f32.mrb[0].mxu1 }
 0x151   :  { %v196_v62 = vpop.f32.mrb[1].mxu0  ;;  %v1224_v63 = vpop.f32.mrb[1].mxu1  ;;  %v202_v12 = vadd.f32 %v1180_v60, %v2120_v59  ;;  %v868_v60 = vld [vmem:[#allocation12 + $0x68] sm:$0xff] }
 0x152   :  { %v197_v2 = vadd.f32 %v2120_v59, %v196_v62  ;;  %v869_v62 = vld [vmem:[#allocation12 + $0x70] sm:$0xff]  ;;  %v870_v63 = vld [vmem:[#allocation12 + $0x78] sm:$0xff] }
 0x154   :  { %v331_v3 = vadd.f32 %v327_v61, %v197_v2  ;;  %v1183_v5 = vpop.f32.mrb[2].mxu0  ;;  %v1748_v61 = vpack.c.bf16 %v868_v60, %v867_v58  ;;  %v1751_v2 = vpack.c.bf16 %v870_v63, %v869_v62 }
 0x155   :  { %v206_v6 = vpop.f32.mrb[3].mxu0  ;;  %v212_v24 = vadd.f32 %v1183_v5, %v2120_v59 }
 0x156   :  { %1764 = vtanh.f32 %v331_v3  ;;  %v207_v18 = vadd.f32 %v2120_v59, %v206_v6 }
 0x158   :  { %v2141_v7 = vpop.f32.mrb[4].mxu0 }
 0x159   :  { %v2143_v8 = vpop.f32.mrb[5].mxu0 }
 0x15a   :  { %v217_v30 = vadd.f32 %v2120_v59, %v2143_v8  ;;  %v968_v8 = vld [vmem:[%s2261_s6] ss:$0 sm:$0xff] }
 0x15c   :  { %v2145_v10 = vpop.f32.mrb[6].mxu0 }
 0x15d   :  { %v2147_v11 = vpop.f32.mrb[7].mxu0  ;;  %v232_v3 = vadd.f32 %v2145_v10, %v2120_v59 }
 0x160   :  { %v1765_v4 = vpop.eup %1764 }
 0x161   :  { %1258 = vmatmul.mubr.f32.vlgmr.msra.gmra.mrb[8].mxu0 %v1765_v4 }
 0x162   :  { %1611 = vmatpush3.bf16.msra.mxu0 %v2048_v9  ;;  %1327 = vmatprep.mubr.msk.f32.mxu0 %vm1930_vm0, %v1931_v1 }
 0x163   :  { %1612 = vmatprep.subr.bf16.mxu0 %v1929_v0 }
 0x166   :  { %1614 = vmatpush3.bf16.msra.mxu0 %v2051_v15 }
 0x167   :  { %1615 = vmatprep.subr.bf16.mxu0 %v1929_v0 }
 0x16a   :  { %1617 = vmatpush3.bf16.msra.mxu0 %v2055_v21 }
 0x16b   :  { %1618 = vmatprep.subr.bf16.mxu0 %v1929_v0 }
 0x16e   :  { %1620 = vmatpush3.bf16.msra.mxu0 %v2059_v28 }
 0x16f   :  { %1621 = vmatprep.subr.bf16.mxu0 %v1929_v0 }
 0x172   :  { %1623 = vmatpush3.bf16.msra.mxu0 %v2063_v34 }
 0x173   :  { %1624 = vmatprep.subr.bf16.mxu0 %v1929_v0 }
 0x176   :  { %1626 = vmatpush3.bf16.msra.mxu0 %v2067_v40 }
 0x177   :  { %1627 = vmatprep.subr.bf16.mxu0 %v1929_v0 }
 0x17a   :  { %1629 = vmatpush3.bf16.msra.mxu0 %v2071_v46 }
 0x17b   :  { %1630 = vmatprep.subr.bf16.mxu0 %v1929_v0 }
 0x17e   :  { %1632 = vmatpush3.bf16.msra.mxu0 %v2075_v50 }
 0x17f   :  { %1657 = vmatprep.subr.bf16.mxu0 %v1929_v0 }
 0x234   :  { %v401_v13 = vpop.f32.mrb[8].mxu0 }
 0x235   :  { %v405_v14 = vadd.f32 %v401_v13, %v202_v12  ;;  %v1259_v16 = vpop.f32.mrb[9].mxu0 }
 0x237   :  { %1766 = vtanh.f32 %v405_v14 }
 0x241   :  { %v1767_v17 = vpop.eup %1766 }
 0x242   :  { %1293 = vmatmul.mubr.f32.vlgmr.msra.gmra.mrb[2].mxu1 %v1767_v17 }
 0x243   :  { %1635 = vmatpush3.bf16.msra.mxu1 %v2048_v9  ;;  %1362 = vmatprep.mubr.msk.f32.mxu1 %vm1930_vm0, %v1931_v1 }
 0x244   :  { %1636 = vmatprep.subr.bf16.mxu1 %v1929_v0 }
 0x247   :  { %1638 = vmatpush3.bf16.msra.mxu1 %v2051_v15 }
 0x248   :  { %1639 = vmatprep.subr.bf16.mxu1 %v1929_v0 }
 0x24b   :  { %1641 = vmatpush3.bf16.msra.mxu1 %v2055_v21 }
 0x24c   :  { %1642 = vmatprep.subr.bf16.mxu1 %v1929_v0 }
 0x24f   :  { %1644 = vmatpush3.bf16.msra.mxu1 %v2059_v28 }
 0x250   :  { %1645 = vmatprep.subr.bf16.mxu1 %v1929_v0 }
 0x253   :  { %1647 = vmatpush3.bf16.msra.mxu1 %v2063_v34 }
 0x254   :  { %1648 = vmatprep.subr.bf16.mxu1 %v1929_v0 }
 0x257   :  { %1650 = vmatpush3.bf16.msra.mxu1 %v2067_v40 }
 0x258   :  { %1651 = vmatprep.subr.bf16.mxu1 %v1929_v0 }
 0x25b   :  { %1653 = vmatpush3.bf16.msra.mxu1 %v2071_v46 }
 0x25c   :  { %1654 = vmatprep.subr.bf16.mxu1 %v1929_v0 }
 0x25f   :  { %1656 = vmatpush3.bf16.msra.mxu1 %v2075_v50 }
 0x260   :  { %1681 = vmatprep.subr.bf16.mxu1 %v1929_v0 }
 0x315   :  { %v475_v19 = vpop.f32.mrb[2].mxu1 }
 0x316   :  { %v479_v20 = vadd.f32 %v475_v19, %v207_v18  ;;  %v1294_v22 = vpop.f32.mrb[3].mxu1 }
 0x318   :  { %1768 = vtanh.f32 %v479_v20 }
 0x322   :  { %v1769_v23 = vpop.eup %1768 }
 0x323   :  { %1328 = vmatmul.mubr.f32.vlgmr.msra.gmra.mrb[10].mxu0 %v1769_v23 }
 0x324   :  { %1659 = vmatpush3.bf16.msra.mxu0 %v2048_v9  ;;  %1397 = vmatprep.mubr.msk.f32.mxu0 %vm1930_vm0, %v1931_v1 }
 0x325   :  { %1660 = vmatprep.subr.bf16.mxu0 %v1929_v0 }
 0x328   :  { %1662 = vmatpush3.bf16.msra.mxu0 %v2051_v15 }
 0x329   :  { %1663 = vmatprep.subr.bf16.mxu0 %v1929_v0 }
 0x32c   :  { %1665 = vmatpush3.bf16.msra.mxu0 %v2055_v21 }
 0x32d   :  { %1666 = vmatprep.subr.bf16.mxu0 %v1929_v0 }
 0x330   :  { %1668 = vmatpush3.bf16.msra.mxu0 %v2059_v28 }
 0x331   :  { %1669 = vmatprep.subr.bf16.mxu0 %v1929_v0 }
 0x334   :  { %1671 = vmatpush3.bf16.msra.mxu0 %v2063_v34 }
 0x335   :  { %1672 = vmatprep.subr.bf16.mxu0 %v1929_v0 }
 0x338   :  { %1674 = vmatpush3.bf16.msra.mxu0 %v2067_v40 }
 0x339   :  { %1675 = vmatprep.subr.bf16.mxu0 %v1929_v0 }
 0x33c   :  { %1677 = vmatpush3.bf16.msra.mxu0 %v2071_v46 }
 0x33d   :  { %1678 = vmatprep.subr.bf16.mxu0 %v1929_v0 }
 0x340   :  { %1680 = vmatpush3.bf16.msra.mxu0 %v2075_v50 }
 0x341   :  { %1705 = vmatprep.subr.bf16.mxu0 %v1929_v0 }
 0x3f6   :  { %v549_v25 = vpop.f32.mrb[10].mxu0 }
 0x3f7   :  { %v553_v26 = vadd.f32 %v549_v25, %v212_v24  ;;  %v1329_v27 = vpop.f32.mrb[11].mxu0 }
 0x3f9   :  { %1770 = vtanh.f32 %v553_v26 }
 0x403   :  { %v1771_v29 = vpop.eup %1770 }
 0x404   :  { %1363 = vmatmul.mubr.f32.vlgmr.msra.gmra.mrb[4].mxu1 %v1771_v29 }
 0x405   :  { %1683 = vmatpush3.bf16.msra.mxu1 %v2048_v9  ;;  %1432 = vmatprep.mubr.msk.f32.mxu1 %vm1930_vm0, %v1931_v1 }
 0x406   :  { %1684 = vmatprep.subr.bf16.mxu1 %v1929_v0 }
 0x409   :  { %1686 = vmatpush3.bf16.msra.mxu1 %v2051_v15 }
 0x40a   :  { %1687 = vmatprep.subr.bf16.mxu1 %v1929_v0 }
 0x40d   :  { %1689 = vmatpush3.bf16.msra.mxu1 %v2055_v21 }
 0x40e   :  { %1690 = vmatprep.subr.bf16.mxu1 %v1929_v0 }
 0x411   :  { %1692 = vmatpush3.bf16.msra.mxu1 %v2059_v28 }
 0x412   :  { %1693 = vmatprep.subr.bf16.mxu1 %v1929_v0 }
 0x415   :  { %1695 = vmatpush3.bf16.msra.mxu1 %v2063_v34 }
 0x416   :  { %1696 = vmatprep.subr.bf16.mxu1 %v1929_v0 }
 0x419   :  { %1698 = vmatpush3.bf16.msra.mxu1 %v2067_v40 }
 0x41a   :  { %1699 = vmatprep.subr.bf16.mxu1 %v1929_v0 }
 0x41d   :  { %1701 = vmatpush3.bf16.msra.mxu1 %v2071_v46 }
 0x41e   :  { %1702 = vmatprep.subr.bf16.mxu1 %v1929_v0 }
 0x421   :  { %1704 = vmatpush3.bf16.msra.mxu1 %v2075_v50 }
 0x422   :  { %1729 = vmatprep.subr.bf16.mxu1 %v1929_v0 }
 0x4d7   :  { %v623_v31 = vpop.f32.mrb[4].mxu1 }
 0x4d8   :  { %v627_v32 = vadd.f32 %v623_v31, %v217_v30  ;;  %v1364_v33 = vpop.f32.mrb[5].mxu1 }
 0x4da   :  { %1772 = vtanh.f32 %v627_v32 }
 0x4e4   :  { %v1773_v35 = vpop.eup %1772 }
 0x4e5   :  { %1398 = vmatmul.mubr.f32.vlgmr.msra.gmra.mrb[12].mxu0 %v1773_v35 }
 0x4e6   :  { %1707 = vmatpush3.bf16.msra.mxu0 %v2048_v9  ;;  %1467 = vmatprep.mubr.msk.f32.mxu0 %vm1930_vm0, %v1931_v1  ;;  %v222_v9 = vadd.f32 %v2141_v7, %v2120_v59 }
 0x4e7   :  { %1708 = vmatprep.subr.bf16.mxu0 %v1929_v0 }
 0x4ea   :  { %1710 = vmatpush3.bf16.msra.mxu0 %v2051_v15 }
 0x4eb   :  { %1711 = vmatprep.subr.bf16.mxu0 %v1929_v0 }
 0x4ee   :  { %1713 = vmatpush3.bf16.msra.mxu0 %v2055_v21 }
 0x4ef   :  { %1714 = vmatprep.subr.bf16.mxu0 %v1929_v0 }
 0x4f2   :  { %1716 = vmatpush3.bf16.msra.mxu0 %v2059_v28 }
 0x4f3   :  { %1717 = vmatprep.subr.bf16.mxu0 %v1929_v0 }
 0x4f6   :  { %1719 = vmatpush3.bf16.msra.mxu0 %v2063_v34 }
 0x4f7   :  { %1720 = vmatprep.subr.bf16.mxu0 %v1929_v0 }
 0x4fa   :  { %1722 = vmatpush3.bf16.msra.mxu0 %v2067_v40  ;;  %v858_v40 = vld [vmem:[#allocation12 + $0x18] sm:$0xff] }
 0x4fb   :  { %1723 = vmatprep.subr.bf16.mxu0 %v1929_v0  ;;  %v1733_v41 = vpack.c.bf16 %v858_v40, %v857_v38 }
 0x4fe   :  { %1725 = vmatpush3.bf16.msra.mxu0 %v2071_v46  ;;  %v862_v46 = vld [vmem:[#allocation12 + $0x38] sm:$0xff] }
 0x4ff   :  { %1726 = vmatprep.subr.bf16.mxu0 %v1929_v0  ;;  %v1739_v47 = vpack.c.bf16 %v862_v46, %v861_v45 }
 0x502   :  { %1728 = vmatpush3.bf16.msra.mxu0 %v2075_v50  ;;  %v227_v50 = vadd.f32 %v2120_v59, %v2147_v11 }
 0x5b8   :  { %v697_v15 = vpop.f32.mrb[12].mxu0 }
 0x5b9   :  { %v701_v21 = vadd.f32 %v697_v15, %v222_v9  ;;  %v1399_v28 = vpop.f32.mrb[13].mxu0 }
 0x5bb   :  { %1774 = vtanh.f32 %v701_v21 }
 0x5c5   :  { %v1775_v34 = vpop.eup %1774 }
 0x5c6   :  { %1433 = vmatmul.mubr.f32.vlgmr.msra.gmra.mrb[6].mxu1 %v1775_v34 }
 0x5c7   :  { %1502 = vmatprep.mubr.msk.f32.mxu1 %vm1930_vm0, %v1931_v1  ;;  %1731 = vmatpush3.bf16.msra.mxu1 %v1730_v39  ;;  %v863_v1 = vld [vmem:[#allocation12 + $0x40] sm:$0xff] }
 0x5c8   :  { %1732 = vmatprep.subr.bf16.mxu1 %v1929_v0  ;;  %v1742_v49 = vpack.c.bf16 %v864_v48, %v863_v1 }
 0x5cb   :  { %1734 = vmatpush3.bf16.msra.mxu1 %v1733_v41 }
 0x5cc   :  { %1735 = vmatprep.subr.bf16.mxu1 %v1929_v0 }
 0x5cf   :  { %1737 = vmatpush3.bf16.msra.mxu1 %v1736_v44 }
 0x5d0   :  { %1738 = vmatprep.subr.bf16.mxu1 %v1929_v0 }
 0x5d3   :  { %1740 = vmatpush3.bf16.msra.mxu1 %v1739_v47 }
 0x5d4   :  { %1741 = vmatprep.subr.bf16.mxu1 %v1929_v0 }
 0x5d7   :  { %1743 = vmatpush3.bf16.msra.mxu1 %v1742_v49 }
 0x5d8   :  { %1744 = vmatprep.subr.bf16.mxu1 %v1929_v0 }
 0x5db   :  { %1746 = vmatpush3.bf16.msra.mxu1 %v1745_v57 }
 0x5dc   :  { %1747 = vmatprep.subr.bf16.mxu1 %v1929_v0 }
 0x5df   :  { %1749 = vmatpush3.bf16.msra.mxu1 %v1748_v61 }
 0x5e0   :  { %1750 = vmatprep.subr.bf16.mxu1 %v1929_v0 }
 0x5e3   :  { %1752 = vmatpush3.bf16.msra.mxu1 %v1751_v2 }
 0x699   :  { %v771_v51 = vpop.f32.mrb[6].mxu1 }
 0x69a   :  { %v775_v52 = vadd.f32 %v771_v51, %v227_v50  ;;  %v1434_v53 = vpop.f32.mrb[7].mxu1 }
 0x69c   :  { %1776 = vtanh.f32 %v775_v52 }
 0x6a6   :  { %v1777_v54 = vpop.eup %1776 }
 0x6a7   :  { %1468 = vmatmul.mubr.f32.vlgmr.msra.gmra.mrb[14].mxu0 %v1777_v54 }
 0x77a   :  { %v845_v4 = vpop.f32.mrb[14].mxu0 }
 0x77b   :  { %v849_v5 = vadd.f32 %v845_v4, %v232_v3  ;;  %v1469_v6 = vpop.f32.mrb[15].mxu0 }
 0x77d   :  { %1778 = vtanh.f32 %v849_v5 }
 0x787   :  { %v1779_v7 = vpop.eup %1778 }
 0x788   :  { %1503 = vmatmul.mubr.f32.vlgmr.msra.gmra.mrb[8].mxu1 %v1779_v7 }
 0x85b   :  { %v944_v11 = vpop.f32.mrb[8].mxu1 }
 0x85c   :  { %v945_v12 = vadd.f32 %v968_v8, %v944_v11  ;;  %v1504_v13 = vpop.f32.mrb[9].mxu1 }
 0x85e   :  { %1780 = vtanh.f32 %v945_v12 }
 0x868   :  { %v1781_v0 = vpop.eup %1780 }
 0x869   :  { %949 = vst [vmem:[#allocation13] sm:$0xff] %v1781_v0 }
 0x86a   :  { %1903 = shalt.err (!%p1900_p2)
}
 0x86b   :  { %s1904_s6 = scalar_lea.hbm %s2262_s7, 128 }
 0x86c   :  { %p1905_p3 = scmp.ne.s32.totalorder %s2262_s7, %s1904_s6  ;;  %p1908_p4 = scmp.lt.u32.totalorder %s1904_s6, %s2262_s7 }
 0x86e   :  { %p1910_p5 = pnand %p1908_p4, %p1905_p3 }
 0x870   :  { %1913 = shalt.err (!%p1910_p5)
}
 0x871   :  { %959 = dma.vmem_to_hbm [thread:$0]  %s957_s14, 128, %s2262_s7, [#allocation6]  }
 0x872   :  { %1920 = dma.done.wait [#allocation6], 128  }
 0x873   :  { %1921 = vsyncadd [#allocation6], 4294967168 }
 0x874   :  { %963 = vsyncpa [#allocation5], 1 }
 0x875   :  { %964 = vsyncpa [#allocation8], 1 }
 0x876   :  { %965 = vsyncpa [#allocation11], 1 }
 0x877   :  { %966 = vsyncpa [#allocation6], 1 }

</bundles_post_ra>
